<compile_context>
chip_gen: v7x
topology: tpu7x:2x2x1
jax: 0.10.0
libtpu: 0.0.40
codegen_flags: <defaults>
</compile_context>

<pallas_src>
import functools

import jax
import jax.numpy as jnp
from jax.experimental import pallas as pl
from jax.experimental.pallas import tpu as pltpu

PI = 3.14159265359          # literal used by the PyTorch module
ACTION_NUM = 2              # forward() hard-codes view(..., 2, atomNum)


def _distribution_net_kernel(state_ref, transT_ref, wT_cos_ref, wT_sin_ref,
                             b_ref, out_ref):
    state = state_ref[...]          # (TB, inputNum)
    transT = transT_ref[...]        # (inputNum, F)
    input_num = transT.shape[0]

    # z = state @ trans^T via unrolled VPU broadcast MACs; contraction depth
    # (inputNum) is tiny, so the MXU would be pure push/pop overhead here.
    z = state[:, 0:1] * transT[0:1, :]
    for d in range(1, input_num):
        z = z + state[:, d:d + 1] * transT[d:d + 1, :]
    pz = z * jnp.float32(PI)

    # fc1: two accumulating MXU dots (cos-half and sin-half of W^T) -- avoids
    # materializing the (TB, 2F) concatenated feature tile.
    logits = jnp.dot(jnp.cos(pz), wT_cos_ref[...],
                     preferred_element_type=jnp.float32)
    logits = logits + jnp.dot(jnp.sin(pz), wT_sin_ref[...],
                              preferred_element_type=jnp.float32)
    logits = logits + b_ref[...]    # (TB, A*K)

    # Per-action softmax over atoms (static, lane-aligned slices; K = 128).
    AK = out_ref.shape[1]
    K = AK // ACTION_NUM
    for a in range(ACTION_NUM):
        l = logits[:, a * K:(a + 1) * K]
        m = jnp.max(l, axis=-1, keepdims=True)
        e = jnp.exp(l - m)
        out_ref[:, a * K:(a + 1) * K] = e * pl.reciprocal(
            jnp.sum(e, axis=-1, keepdims=True), approx=False)


def prepare_params(trans, w, b):
    """Hoisted once at init: transposes, f32 casts, cos/sin weight split.

    trans: (F, inputNum)   -- cfg.trans
    w    : (A*K, 2F)       -- fc1.weight
    b    : (A*K,)          -- fc1.bias
    """
    f_dim = trans.shape[0]
    transT = jnp.transpose(jnp.asarray(trans, jnp.float32))   # (inputNum, F)
    wT = jnp.transpose(jnp.asarray(w, jnp.float32))           # (2F, A*K)
    wT_cos = wT[:f_dim]                                       # multiplies cos feats
    wT_sin = wT[f_dim:]                                       # multiplies sin feats
    bias = jnp.asarray(b, jnp.float32).reshape(1, -1)         # (1, A*K)
    return transT, wT_cos, wT_sin, bias


def _round_up(x, m):
    return (x + m - 1) // m * m


@functools.partial(jax.jit, static_argnames=("batch_flag",))
def distribution_net_forward(state, params, batch_flag=1):
    """state: (B, inputNum); params: output of prepare_params()."""
    transT, wT_cos, wT_sin, bias = params
    input_num, f_dim = transT.shape
    AK = bias.shape[1]
    K = AK // ACTION_NUM

    state = jnp.asarray(state, jnp.float32)
    B = state.shape[0]
    if batch_flag != 1 and B != 1:
        raise ValueError("batch_flag != 1 requires a single state row (B == 1)")

    # Batch tile: sublane-aligned; weights stay VMEM-resident across the grid,
    # only state/output blocks stream.
    block_b = 128 if B >= 128 else _round_up(B, 8)
    B_pad = _round_up(B, block_b)
    if B_pad != B:
        state = jnp.pad(state, ((0, B_pad - B), (0, 0)))
    grid = (B_pad // block_b,)

    out_flat = pl.pallas_call(
        _distribution_net_kernel,
        out_shape=jax.ShapeDtypeStruct((B_pad, AK), jnp.float32),
        grid=grid,
        in_specs=[
            pl.BlockSpec((block_b, input_num), lambda i: (i, 0)),  # state   (streamed)
            pl.BlockSpec((input_num, f_dim), lambda i: (0, 0)),    # trans^T (resident)
            pl.BlockSpec((f_dim, AK), lambda i: (0, 0)),           # W^T cos (resident)
            pl.BlockSpec((f_dim, AK), lambda i: (0, 0)),           # W^T sin (resident)
            pl.BlockSpec((1, AK), lambda i: (0, 0)),               # bias    (resident)
        ],
        out_specs=pl.BlockSpec((block_b, AK), lambda i: (i, 0)),
        compiler_params=pltpu.CompilerParams(
            dimension_semantics=("parallel",)),
    )(state, transT, wT_cos, wT_sin, bias)

    out_flat = out_flat[:B]
    if batch_flag == 1:
        return out_flat.reshape(B, ACTION_NUM, K)
    return out_flat.reshape(ACTION_NUM, K)


def _reference_forward(state, trans, w, b, batch_flag=1):
    """Pure-JAX reference mirroring the PyTorch forward exactly."""
    z = jnp.dot(trans, state.T) * PI                    # (F, B)
    x = jnp.concatenate([jnp.cos(z), jnp.sin(z)], 0)    # (2F, B)
    out = jnp.dot(x.T, w.T) + b                         # (B, A*K)
    B = state.shape[0]
    K = w.shape[0] // ACTION_NUM
    if batch_flag == 1:
        out = out.reshape(B, ACTION_NUM, K)
        return jax.nn.softmax(out, axis=2)
    out = out.reshape(ACTION_NUM, K)
    return jax.nn.softmax(out, axis=1)


def _make_fourier_trans(basis_num, input_num):
    """cfg.trans: all multi-indices in {0..basisNum}^inputNum, shape (F, inputNum)."""
    F = (basis_num + 1) ** input_num
    idx = jnp.arange(F)
    cols = []
    for d in range(input_num):
        cols.append((idx // ((basis_num + 1) ** (input_num - 1 - d))) % (basis_num + 1))
    return jnp.stack(cols, axis=1).astype(jnp.float32)


if __name__ == "__main__":
    # cfg: basisNum=3, inputNum=4 -> F=256, feature dim 2F=512; actionNum=2, atomNum=128
    basis_num, input_num = 3, 4
    action_num, atom_num = ACTION_NUM, 128
    batch = 8

    F = (basis_num + 1) ** input_num
    in_features = 2 * F
    out_features = action_num * atom_num

    key = jax.random.PRNGKey(0)
    k_state, k_w, k_b = jax.random.split(key, 3)

    state = jax.random.uniform(k_state, (batch, input_num), jnp.float32)   # states in [0, 1]
    trans = _make_fourier_trans(basis_num, input_num)                      # (F, inputNum)
    w_scale = (2.0 / (in_features + out_features)) ** 0.5
    w = jax.random.normal(k_w, (out_features, in_features), jnp.float32) * w_scale
    b = jax.random.normal(k_b, (out_features,), jnp.float32) * 0.01

    params = prepare_params(trans, w, b)   # hoisted once (transposes / casts / split)

    out = distribution_net_forward(state, params, batch_flag=1)
    out = jax.block_until_ready(out)

    ref = _reference_forward(state, trans, w, b, batch_flag=1)
    assert out.shape == (batch, action_num, atom_num)
    assert jnp.allclose(out, ref, atol=1e-5, rtol=1e-5), "mismatch vs reference (batched)"
    assert jnp.allclose(jnp.sum(out, axis=2), 1.0, atol=1e-5)

    # non-batched path (B == 1)
    out1 = distribution_net_forward(state[:1], params, batch_flag=0)
    out1 = jax.block_until_ready(out1)
    ref1 = _reference_forward(state[:1], trans, w, b, batch_flag=0)
    assert out1.shape == (action_num, atom_num)
    assert jnp.allclose(out1, ref1, atol=1e-5, rtol=1e-5), "mismatch vs reference (single)"

    print("KERNEL_OK")
</pallas_src>

<mosaic_0001>
module attributes {stable_mosaic.version = 11 : i64} {
  func.func @_distribution_net_kernel(%arg0: i32, %arg1: memref<8x4xf32, #tpu.memory_space<vmem>>, %arg2: memref<4x256xf32, #tpu.memory_space<vmem>>, %arg3: memref<256x256xf32, #tpu.memory_space<vmem>>, %arg4: memref<256x256xf32, #tpu.memory_space<vmem>>, %arg5: memref<1x256xf32, #tpu.memory_space<vmem>>, %arg6: memref<8x256xf32, #tpu.memory_space<vmem>>) attributes {dimension_semantics = [#tpu.dimension_semantics<parallel>], iteration_bounds = array<i64: 1>, scalar_prefetch = 0 : i64, scratch_operands = 0 : i64, tpu.core_type = #tpu.core_type<tc>, window_params = [{transform_indices = @transform_0, window_bounds = array<i64: 8, 4>}, {pipeline_mode = #tpu.pipeline_mode<synchronous>, transform_indices = @transform_1, window_bounds = array<i64: 4, 256>}, {pipeline_mode = #tpu.pipeline_mode<synchronous>, transform_indices = @transform_2, window_bounds = array<i64: 256, 256>}, {pipeline_mode = #tpu.pipeline_mode<synchronous>, transform_indices = @transform_3, window_bounds = array<i64: 256, 256>}, {pipeline_mode = #tpu.pipeline_mode<synchronous>, transform_indices = @transform_4, window_bounds = array<i64: 1, 256>}, {transform_indices = @transform_5, window_bounds = array<i64: 8, 256>}]} {
    %c0 = arith.constant 0 : index
    %c0_0 = arith.constant 0 : index
    %0 = vector.load %arg1[%c0, %c0_0] : memref<8x4xf32, #tpu.memory_space<vmem>>, vector<8x4xf32>
    %c0_1 = arith.constant 0 : index
    %c0_2 = arith.constant 0 : index
    %1 = vector.load %arg2[%c0_1, %c0_2] : memref<4x256xf32, #tpu.memory_space<vmem>>, vector<4x256xf32>
    %2 = vector.extract_strided_slice %0 {offsets = [0, 0], sizes = [8, 1], strides = [1, 1]} : vector<8x4xf32> to vector<8x1xf32>
    %3 = vector.extract_strided_slice %1 {offsets = [0, 0], sizes = [1, 256], strides = [1, 1]} : vector<4x256xf32> to vector<1x256xf32>
    %4 = vector.broadcast %2 : vector<8x1xf32> to vector<8x256xf32>
    %5 = vector.broadcast %3 : vector<1x256xf32> to vector<8x256xf32>
    %6 = arith.mulf %4, %5 : vector<8x256xf32>
    %7 = vector.extract_strided_slice %0 {offsets = [0, 1], sizes = [8, 1], strides = [1, 1]} : vector<8x4xf32> to vector<8x1xf32>
    %8 = vector.extract_strided_slice %1 {offsets = [1, 0], sizes = [1, 256], strides = [1, 1]} : vector<4x256xf32> to vector<1x256xf32>
    %9 = vector.broadcast %7 : vector<8x1xf32> to vector<8x256xf32>
    %10 = vector.broadcast %8 : vector<1x256xf32> to vector<8x256xf32>
    %11 = arith.mulf %9, %10 : vector<8x256xf32>
    %12 = arith.addf %6, %11 : vector<8x256xf32>
    %13 = vector.extract_strided_slice %0 {offsets = [0, 2], sizes = [8, 1], strides = [1, 1]} : vector<8x4xf32> to vector<8x1xf32>
    %14 = vector.extract_strided_slice %1 {offsets = [2, 0], sizes = [1, 256], strides = [1, 1]} : vector<4x256xf32> to vector<1x256xf32>
    %15 = vector.broadcast %13 : vector<8x1xf32> to vector<8x256xf32>
    %16 = vector.broadcast %14 : vector<1x256xf32> to vector<8x256xf32>
    %17 = arith.mulf %15, %16 : vector<8x256xf32>
    %18 = arith.addf %12, %17 : vector<8x256xf32>
    %19 = vector.extract_strided_slice %0 {offsets = [0, 3], sizes = [8, 1], strides = [1, 1]} : vector<8x4xf32> to vector<8x1xf32>
    %20 = vector.extract_strided_slice %1 {offsets = [3, 0], sizes = [1, 256], strides = [1, 1]} : vector<4x256xf32> to vector<1x256xf32>
    %21 = vector.broadcast %19 : vector<8x1xf32> to vector<8x256xf32>
    %22 = vector.broadcast %20 : vector<1x256xf32> to vector<8x256xf32>
    %23 = arith.mulf %21, %22 : vector<8x256xf32>
    %24 = arith.addf %18, %23 : vector<8x256xf32>
    %cst = arith.constant 3.14159274 : f32
    %25 = vector.broadcast %cst : f32 to vector<8x256xf32>
    %26 = arith.mulf %24, %25 : vector<8x256xf32>
    %27 = math.cos %26 : vector<8x256xf32>
    %c0_3 = arith.constant 0 : index
    %c0_4 = arith.constant 0 : index
    %28 = vector.load %arg3[%c0_3, %c0_4] : memref<256x256xf32, #tpu.memory_space<vmem>>, vector<256x256xf32>
    %cst_5 = arith.constant dense<0.000000e+00> : vector<8x256xf32>
    %29 = tpu.matmul %27, %28, %cst_5 {dimension_numbers = #tpu.dot_dimension_numbers<[1], [0], [0], [1], [0, 0, 1, 1], [], []>} : vector<8x256xf32>, vector<256x256xf32>, vector<8x256xf32> -> vector<8x256xf32>
    %30 = math.sin %26 : vector<8x256xf32>
    %c0_6 = arith.constant 0 : index
    %c0_7 = arith.constant 0 : index
    %31 = vector.load %arg4[%c0_6, %c0_7] : memref<256x256xf32, #tpu.memory_space<vmem>>, vector<256x256xf32>
    %cst_8 = arith.constant dense<0.000000e+00> : vector<8x256xf32>
    %32 = tpu.matmul %30, %31, %cst_8 {dimension_numbers = #tpu.dot_dimension_numbers<[1], [0], [0], [1], [0, 0, 1, 1], [], []>} : vector<8x256xf32>, vector<256x256xf32>, vector<8x256xf32> -> vector<8x256xf32>
    %33 = arith.addf %29, %32 : vector<8x256xf32>
    %c0_9 = arith.constant 0 : index
    %c0_10 = arith.constant 0 : index
    %34 = vector.load %arg5[%c0_9, %c0_10] : memref<1x256xf32, #tpu.memory_space<vmem>>, vector<1x256xf32>
    %35 = vector.broadcast %34 : vector<1x256xf32> to vector<8x256xf32>
    %36 = arith.addf %33, %35 : vector<8x256xf32>
    %37 = vector.extract_strided_slice %36 {offsets = [0, 0], sizes = [8, 128], strides = [1, 1]} : vector<8x256xf32> to vector<8x128xf32>
    %cst_11 = arith.constant dense<0xFF800000> : vector<8xf32>
    %38 = vector.multi_reduction <maximumf>, %37, %cst_11 [1] : vector<8x128xf32> to vector<8xf32>
    %39 = vector.shape_cast %38 : vector<8xf32> to vector<8x1xf32>
    %40 = vector.broadcast %39 : vector<8x1xf32> to vector<8x128xf32>
    %41 = arith.subf %37, %40 : vector<8x128xf32>
    %42 = math.exp %41 : vector<8x128xf32>
    %cst_12 = arith.constant dense<0.000000e+00> : vector<8xf32>
    %43 = vector.multi_reduction <add>, %42, %cst_12 [1] : vector<8x128xf32> to vector<8xf32>
    %44 = vector.shape_cast %43 : vector<8xf32> to vector<8x1xf32>
    %45 = tpu.reciprocal %44 : vector<8x1xf32> -> vector<8x1xf32>
    %46 = vector.broadcast %45 : vector<8x1xf32> to vector<8x128xf32>
    %47 = arith.mulf %42, %46 : vector<8x128xf32>
    %c0_13 = arith.constant 0 : index
    %c0_14 = arith.constant 0 : index
    %48 = vector.load %arg6[%c0_13, %c0_14] : memref<8x256xf32, #tpu.memory_space<vmem>>, vector<8x128xf32>
    tpu.vector_store %arg6[%c0_13, %c0_14], %47 {strides = array<i32>} : memref<8x256xf32, #tpu.memory_space<vmem>>, vector<8x128xf32>,
    %49 = vector.extract_strided_slice %36 {offsets = [0, 128], sizes = [8, 128], strides = [1, 1]} : vector<8x256xf32> to vector<8x128xf32>
    %cst_15 = arith.constant dense<0xFF800000> : vector<8xf32>
    %50 = vector.multi_reduction <maximumf>, %49, %cst_15 [1] : vector<8x128xf32> to vector<8xf32>
    %51 = vector.shape_cast %50 : vector<8xf32> to vector<8x1xf32>
    %52 = vector.broadcast %51 : vector<8x1xf32> to vector<8x128xf32>
    %53 = arith.subf %49, %52 : vector<8x128xf32>
    %54 = math.exp %53 : vector<8x128xf32>
    %cst_16 = arith.constant dense<0.000000e+00> : vector<8xf32>
    %55 = vector.multi_reduction <add>, %54, %cst_16 [1] : vector<8x128xf32> to vector<8xf32>
    %56 = vector.shape_cast %55 : vector<8xf32> to vector<8x1xf32>
    %57 = tpu.reciprocal %56 : vector<8x1xf32> -> vector<8x1xf32>
    %58 = vector.broadcast %57 : vector<8x1xf32> to vector<8x128xf32>
    %59 = arith.mulf %54, %58 : vector<8x128xf32>
    %c0_17 = arith.constant 0 : index
    %c128 = arith.constant 128 : index
    %60 = vector.load %arg6[%c0_17, %c128] : memref<8x256xf32, #tpu.memory_space<vmem>>, vector<8x128xf32>
    tpu.vector_store %arg6[%c0_17, %c128], %59 {strides = array<i32>} : memref<8x256xf32, #tpu.memory_space<vmem>>, vector<8x128xf32>,
    return
  }
  func.func @transform_0(%arg0: i32) -> (i32, i32) {
    %c0_i32 = arith.constant 0 : i32
    %c0_i32_0 = arith.constant 0 : i32
    return %arg0, %c0_i32 : i32, i32
  }
  func.func @transform_1(%arg0: i32) -> (i32, i32) {
    %c0_i32 = arith.constant 0 : i32
    %c0_i32_0 = arith.constant 0 : i32
    %c0_i32_1 = arith.constant 0 : i32
    return %c0_i32, %c0_i32_0 : i32, i32
  }
  func.func @transform_2(%arg0: i32) -> (i32, i32) {
    %c0_i32 = arith.constant 0 : i32
    %c0_i32_0 = arith.constant 0 : i32
    %c0_i32_1 = arith.constant 0 : i32
    return %c0_i32, %c0_i32_0 : i32, i32
  }
  func.func @transform_3(%arg0: i32) -> (i32, i32) {
    %c0_i32 = arith.constant 0 : i32
    %c0_i32_0 = arith.constant 0 : i32
    %c0_i32_1 = arith.constant 0 : i32
    return %c0_i32, %c0_i32_0 : i32, i32
  }
  func.func @transform_4(%arg0: i32) -> (i32, i32) {
    %c0_i32 = arith.constant 0 : i32
    %c0_i32_0 = arith.constant 0 : i32
    %c0_i32_1 = arith.constant 0 : i32
    return %c0_i32, %c0_i32_0 : i32, i32
  }
  func.func @transform_5(%arg0: i32) -> (i32, i32) {
    %c0_i32 = arith.constant 0 : i32
    %c0_i32_0 = arith.constant 0 : i32
    return %arg0, %c0_i32 : i32, i32
  }
}

</mosaic_0001>

<bundles_post_ra>
// kernel: distribution_net_forward.1
= control target key start
LH: loop header
LB: loop body
LE: loop exit
PB: predicated region body
PF: predicated region fallthrough
CT: control target
= control target key end

     0   :  { %10 = vsyncpa [#allocation3], 0  ;;  %s1278_s0 = inlined_call_operand.vmem [shape: f32[8,4], index: 0, kind: input, shape index: {}]   ;;  %s1279_s1 = inlined_call_operand.vmem [shape: f32[4,256], index: 1, kind: input, shape index: {}]   ;;  %s1280_s2 = inlined_call_operand.hbm [shape: f32[256,256], index: 2, kind: input, shape index: {}]   ;;  %s1281_s3 = inlined_call_operand.hbm [shape: f32[256,256], index: 3, kind: input, shape index: {}]   ;;  %s1282_s4 = inlined_call_operand.vmem [shape: f32[1,256], index: 4, kind: input, shape index: {}]   ;;  %s1283_s5 = inlined_call_operand.vmem [shape: f32[8,256], index: 5, kind: output, shape index: {}]  }
   0x1   :  { %11 = vsyncpa [#allocation5], 0  ;;  %s1117_s18 = smov [#allocation2]   ;;  %s1069_s22 = scalar_lea.hbm %s1280_s2, 8192 }
   0x2   :  { %s21_s19 = sshll.u32 %s1117_s18, 4  ;;  %p1070_p0 = scmp.ne.s32.totalorder %s1280_s2, %s1069_s22  ;;  %s22_s19 = int_to_ptr.vmem [resolvable:$true] %s21_s19 }
   0x3   :  { %p1073_p1 = scmp.lt.u32.totalorder %s1069_s22, %s1280_s2 }
   0x5   :  { %p1075_p2 = pnand %p1073_p1, %p1070_p0 }
   0x7   :  { %1078 = shalt.err (!%p1075_p2)
}
   0x8   :  { %s1079_s27 = scalar_lea.vmem %s22_s19, 8192  ;;  %p1084_p4 = scmp.lt.s32.totalorder %s22_s19, %s22_s19 }
   0x9   :  { %p1080_p3 = scmp.ne.s32.totalorder %s22_s19, %s1079_s27  ;;  %p1085_p5 = scmp.lt.s32.totalorder %s1079_s27, %s1079_s27 }
   0xb   :  { %p1086_p6 = por %p1085_p5, %p1084_p4 }
   0xd   :  { %p1087_p7 = pnand %p1086_p6, %p1080_p3 }
   0xf   :  { %1090 = shalt.err (!%p1087_p7)
}
  0x10   :  { %s1118_s28 = smov 256   ;;  %s1119_s29 = smov 16  }
  0x11   :  { %27 = dma.hbm_to_vmem [thread:$0]  %s1280_s2, 8192, %s22_s19, [#allocation3], %s1118_s28, %s1118_s28, %s1119_s29  }
  0x12   :  { %s1120_s7 = smov [#allocation4]   ;;  %s1091_s11 = scalar_lea.hbm %s1281_s3, 8192 }
  0x13   :  { %s33_s8 = sshll.u32 %s1120_s7, 4  ;;  %p1092_p8 = scmp.ne.s32.totalorder %s1281_s3, %s1091_s11  ;;  %s34_s8 = int_to_ptr.vmem [resolvable:$true] %s33_s8 }
  0x14   :  { %p1095_p9 = scmp.lt.u32.totalorder %s1091_s11, %s1281_s3 }
  0x16   :  { %p1097_p10 = pnand %p1095_p9, %p1092_p8 }
  0x18   :  { %1100 = shalt.err (!%p1097_p10)
}
  0x19   :  { %s1101_s16 = scalar_lea.vmem %s34_s8, 8192  ;;  %p1106_p12 = scmp.lt.s32.totalorder %s34_s8, %s34_s8 }
  0x1a   :  { %p1102_p11 = scmp.ne.s32.totalorder %s34_s8, %s1101_s16  ;;  %p1107_p13 = scmp.lt.s32.totalorder %s1101_s16, %s1101_s16 }
  0x1c   :  { %p1108_p0 = por %p1107_p13, %p1106_p12 }
  0x1e   :  { %p1109_p1 = pnand %p1108_p0, %p1102_p11 }
  0x20   :  { %1112 = shalt.err (!%p1109_p1)
}
  0x21   :  { %39 = dma.hbm_to_vmem [thread:$0]  %s1281_s3, 8192, %s34_s8, [#allocation5], %s1118_s28, %s1118_s28, %s1119_s29  }
  0x22   :  { %1113 = dma.done.wait [#allocation3], 8192  }
  0x23   :  { %1114 = vsyncadd [#allocation3], 4294959104 }
  0x24   :  { %1115 = dma.done.wait [#allocation5], 8192  }
  0x25   :  { %1116 = vsyncadd [#allocation5], 4294959104  ;;  %v1121_v0 = vmov 0   ;;  %v1122_v1 = vmov 2   ;;  %v48_v2 = vld [vmem:[%s1278_s0] sm:$0xff]  ;;  %v1123_v3 = vmov 1  }
  0x26   :  { %1048 = vset.pattern.permute.xlu0 %v1121_v0  ;;  %1050 = vset.pattern.permute.xlu1 %v1122_v1  ;;  %v1124_v4 = vmov 3   ;;  %v635_v5 = vld [vmem:[#allocation4 + $0x8] sm:$0xff]  ;;  %v637_v6 = vld [vmem:[#allocation4 + $0x18] sm:$0xff]  ;;  %v634_v10 = vld [vmem:[#allocation4] sm:$0xff] }
  0x27   :  { %52 = vperm.xlu0 %1048, %v48_v2   ;;  %103 = vperm.xlu1 %1050, %v48_v2   ;;  %v363_v7 = vld [vmem:[#allocation2 + $0x8] sm:$0xff]  ;;  %v896_v8 = vpack.c.bf16 %v637_v6, %v635_v5  ;;  %v365_v9 = vld [vmem:[#allocation2 + $0x18] sm:$0xff]  ;;  %v636_v11 = vld [vmem:[#allocation4 + $0x10] sm:$0xff] }
  0x28   :  { %v960_v12 = vpack.c.bf16 %v365_v9, %v363_v7  ;;  %v898_v13 = vpack.c.bf16 %v636_v11, %v634_v10  ;;  %v362_v14 = vld [vmem:[#allocation2] sm:$0xff]  ;;  %v364_v15 = vld [vmem:[#allocation2 + $0x10] sm:$0xff]  ;;  %v639_v16 = vld [vmem:[#allocation4 + $0x28] sm:$0xff] }
  0x29   :  { %897 = vmatprep.subr.bf16.mxu1 %v896_v8  ;;  %v962_v17 = vpack.c.bf16 %v364_v15, %v362_v14  ;;  %v641_v18 = vld [vmem:[#allocation4 + $0x38] sm:$0xff]  ;;  %v367_v19 = vld [vmem:[#allocation2 + $0x28] sm:$0xff]  ;;  %v638_v23 = vld [vmem:[#allocation4 + $0x20] sm:$0xff] }
  0x2a   :  { %v369_v20 = vld [vmem:[#allocation2 + $0x38] sm:$0xff]  ;;  %961 = vmatprep.subr.bf16.mxu0 %v960_v12  ;;  %899 = vmatpush1.bf16.msra.mxu1 %v898_v13  ;;  %v900_v21 = vpack.c.bf16 %v641_v18, %v639_v16  ;;  %v640_v24 = vld [vmem:[#allocation4 + $0x30] sm:$0xff]  ;;  %v366_v25 = vld [vmem:[#allocation2 + $0x20] sm:$0xff] }
  0x2b   :  { %1049 = vset.pattern.permute.xlu0 %v1123_v3  ;;  %1051 = vset.pattern.permute.xlu1 %v1124_v4  ;;  %v964_v22 = vpack.c.bf16 %v369_v20, %v367_v19  ;;  %v902_v26 = vpack.c.bf16 %v640_v24, %v638_v23  ;;  %v368_v27 = vld [vmem:[#allocation2 + $0x30] sm:$0xff]  ;;  %v643_v28 = vld [vmem:[#allocation4 + $0x48] sm:$0xff]  ;;  %v645_v29 = vld [vmem:[#allocation4 + $0x58] sm:$0xff] }
  0x2c   :  { %77 = vperm.xlu0 %1049, %v48_v2   ;;  %129 = vperm.xlu1 %1051, %v48_v2   ;;  %v966_v30 = vpack.c.bf16 %v368_v27, %v366_v25  ;;  %v904_v31 = vpack.c.bf16 %v645_v29, %v643_v28  ;;  %v371_v32 = vld [vmem:[#allocation2 + $0x48] sm:$0xff]  ;;  %v373_v33 = vld [vmem:[#allocation2 + $0x58] sm:$0xff]  ;;  %v642_v34 = vld [vmem:[#allocation4 + $0x40] sm:$0xff] }
  0x2d   :  { %963 = vmatpush1.bf16.msra.mxu0 %v962_v17  ;;  %901 = vmatprep.subr.bf16.mxu1 %v900_v21  ;;  %v968_v35 = vpack.c.bf16 %v373_v33, %v371_v32  ;;  %v644_v36 = vld [vmem:[#allocation4 + $0x50] sm:$0xff]  ;;  %v370_v37 = vld [vmem:[#allocation2 + $0x40] sm:$0xff]  ;;  %v647_v40 = vld [vmem:[#allocation4 + $0x68] sm:$0xff] }
  0x2e   :  { %965 = vmatprep.subr.bf16.mxu0 %v964_v22  ;;  %v372_v38 = vld [vmem:[#allocation2 + $0x50] sm:$0xff]  ;;  %903 = vmatpush1.bf16.msra.mxu1 %v902_v26  ;;  %v906_v39 = vpack.c.bf16 %v644_v36, %v642_v34  ;;  %v649_v41 = vld [vmem:[#allocation4 + $0x78] sm:$0xff]  ;;  %v375_v42 = vld [vmem:[#allocation2 + $0x68] sm:$0xff] }
  0x2f   :  { %905 = vmatprep.subr.bf16.mxu1 %v904_v31  ;;  %v970_v43 = vpack.c.bf16 %v372_v38, %v370_v37  ;;  %v908_v44 = vpack.c.bf16 %v649_v41, %v647_v40  ;;  %v377_v45 = vld [vmem:[#allocation2 + $0x78] sm:$0xff]  ;;  %v646_v46 = vld [vmem:[#allocation4 + $0x60] sm:$0xff]  ;;  %v648_v47 = vld [vmem:[#allocation4 + $0x70] sm:$0xff] }
  0x30   :  { %1052 = vset.pattern.permute.xlu0 %v1124_v4  ;;  %v972_v48 = vpack.c.bf16 %v377_v45, %v375_v42  ;;  %v374_v49 = vld [vmem:[#allocation2 + $0x60] sm:$0xff]  ;;  %v376_v50 = vld [vmem:[#allocation2 + $0x70] sm:$0xff]  ;;  %v651_v51 = vld [vmem:[#allocation4 + $0x88] sm:$0xff]  ;;  %v910_v55 = vpack.c.bf16 %v648_v47, %v646_v46 }
  0x31   :  { %967 = vmatpush1.bf16.msra.mxu0 %v966_v30  ;;  %v653_v52 = vld [vmem:[#allocation4 + $0x98] sm:$0xff]  ;;  %v379_v53 = vld [vmem:[#allocation2 + $0x88] sm:$0xff]  ;;  %v974_v56 = vpack.c.bf16 %v376_v50, %v374_v49  ;;  %v650_v58 = vld [vmem:[#allocation4 + $0x80] sm:$0xff] }
  0x32   :  { %969 = vmatprep.subr.bf16.mxu0 %v968_v35  ;;  %v381_v54 = vld [vmem:[#allocation2 + $0x98] sm:$0xff]  ;;  %907 = vmatpush1.bf16.msra.mxu1 %v906_v39  ;;  %v912_v57 = vpack.c.bf16 %v653_v52, %v651_v51  ;;  %v652_v59 = vld [vmem:[#allocation4 + $0x90] sm:$0xff]  ;;  %v378_v60 = vld [vmem:[#allocation2 + $0x80] sm:$0xff] }
  0x33   :  { %909 = vmatprep.subr.bf16.mxu1 %v908_v44  ;;  %v976_v61 = vpack.c.bf16 %v381_v54, %v379_v53  ;;  %v380_v62 = vld [vmem:[#allocation2 + $0x90] sm:$0xff]  ;;  %v655_v63 = vld [vmem:[#allocation4 + $0xa8] sm:$0xff]  ;;  %v657_v0 = vld [vmem:[#allocation4 + $0xb8] sm:$0xff]  ;;  %v914_v3 = vpack.c.bf16 %v652_v59, %v650_v58 }
  0x34   :  { %v383_v1 = vld [vmem:[#allocation2 + $0xa8] sm:$0xff]  ;;  %v385_v2 = vld [vmem:[#allocation2 + $0xb8] sm:$0xff]  ;;  %v978_v4 = vpack.c.bf16 %v380_v62, %v378_v60  ;;  %v916_v5 = vpack.c.bf16 %v657_v0, %v655_v63  ;;  %v654_v6 = vld [vmem:[#allocation4 + $0xa0] sm:$0xff] }
  0x35   :  { %971 = vmatpush1.bf16.msra.mxu0 %v970_v43  ;;  %v656_v7 = vld [vmem:[#allocation4 + $0xb0] sm:$0xff]  ;;  %v382_v8 = vld [vmem:[#allocation2 + $0xa0] sm:$0xff]  ;;  %v980_v9 = vpack.c.bf16 %v385_v2, %v383_v1  ;;  %v659_v11 = vld [vmem:[#allocation4 + $0xc8] sm:$0xff] }
  0x36   :  { %973 = vmatprep.subr.bf16.mxu0 %v972_v48  ;;  %911 = vmatpush1.bf16.msra.mxu1 %v910_v55  ;;  %v384_v10 = vld [vmem:[#allocation2 + $0xb0] sm:$0xff]  ;;  %v661_v12 = vld [vmem:[#allocation4 + $0xd8] sm:$0xff]  ;;  %v387_v13 = vld [vmem:[#allocation2 + $0xc8] sm:$0xff]  ;;  %v918_v15 = vpack.c.bf16 %v656_v7, %v654_v6 }
  0x37   :  { %913 = vmatprep.subr.bf16.mxu1 %v912_v57  ;;  %v389_v14 = vld [vmem:[#allocation2 + $0xd8] sm:$0xff]  ;;  %v982_v16 = vpack.c.bf16 %v384_v10, %v382_v8  ;;  %v920_v17 = vpack.c.bf16 %v661_v12, %v659_v11  ;;  %v658_v18 = vld [vmem:[#allocation4 + $0xc0] sm:$0xff]  ;;  %v660_v19 = vld [vmem:[#allocation4 + $0xd0] sm:$0xff] }
  0x38   :  { %v386_v20 = vld [vmem:[#allocation2 + $0xc0] sm:$0xff]  ;;  %v984_v21 = vpack.c.bf16 %v389_v14, %v387_v13  ;;  %v388_v22 = vld [vmem:[#allocation2 + $0xd0] sm:$0xff]  ;;  %v663_v23 = vld [vmem:[#allocation4 + $0xe8] sm:$0xff]  ;;  %v922_v27 = vpack.c.bf16 %v660_v19, %v658_v18 }
  0x39   :  { %975 = vmatpush1.bf16.msra.mxu0 %v974_v56  ;;  %v665_v24 = vld [vmem:[#allocation4 + $0xf8] sm:$0xff]  ;;  %v391_v25 = vld [vmem:[#allocation2 + $0xe8] sm:$0xff]  ;;  %v986_v28 = vpack.c.bf16 %v388_v22, %v386_v20  ;;  %v662_v30 = vld [vmem:[#allocation4 + $0xe0] sm:$0xff] }
  0x3a   :  { %977 = vmatprep.subr.bf16.mxu0 %v976_v61  ;;  %915 = vmatpush1.bf16.msra.mxu1 %v914_v3  ;;  %v393_v26 = vld [vmem:[#allocation2 + $0xf8] sm:$0xff]  ;;  %v924_v29 = vpack.c.bf16 %v665_v24, %v663_v23  ;;  %v664_v31 = vld [vmem:[#allocation4 + $0xf0] sm:$0xff]  ;;  %v390_v32 = vld [vmem:[#allocation2 + $0xe0] sm:$0xff] }
  0x3b   :  { %917 = vmatprep.subr.bf16.mxu1 %v916_v5  ;;  %v988_v33 = vpack.c.bf16 %v393_v26, %v391_v25  ;;  %v392_v34 = vld [vmem:[#allocation2 + $0xf0] sm:$0xff]  ;;  %v667_v35 = vld [vmem:[#allocation4 + $0x108] sm:$0xff]  ;;  %v669_v36 = vld [vmem:[#allocation4 + $0x118] sm:$0xff]  ;;  %v926_v39 = vpack.c.bf16 %v664_v31, %v662_v30 }
  0x3c   :  { %v395_v37 = vld [vmem:[#allocation2 + $0x108] sm:$0xff]  ;;  %v397_v38 = vld [vmem:[#allocation2 + $0x118] sm:$0xff]  ;;  %v990_v40 = vpack.c.bf16 %v392_v34, %v390_v32  ;;  %v928_v41 = vpack.c.bf16 %v669_v36, %v667_v35  ;;  %v666_v42 = vld [vmem:[#allocation4 + $0x100] sm:$0xff] }
  0x3d   :  { %979 = vmatpush1.bf16.msra.mxu0 %v978_v4  ;;  %v668_v43 = vld [vmem:[#allocation4 + $0x110] sm:$0xff]  ;;  %v394_v44 = vld [vmem:[#allocation2 + $0x100] sm:$0xff]  ;;  %v992_v45 = vpack.c.bf16 %v397_v38, %v395_v37  ;;  %v671_v47 = vld [vmem:[#allocation4 + $0x128] sm:$0xff] }
  0x3e   :  { %981 = vmatprep.subr.bf16.mxu0 %v980_v9  ;;  %919 = vmatpush1.bf16.msra.mxu1 %v918_v15  ;;  %v396_v46 = vld [vmem:[#allocation2 + $0x110] sm:$0xff]  ;;  %v673_v48 = vld [vmem:[#allocation4 + $0x138] sm:$0xff]  ;;  %v399_v49 = vld [vmem:[#allocation2 + $0x128] sm:$0xff]  ;;  %v930_v51 = vpack.c.bf16 %v668_v43, %v666_v42 }
  0x3f   :  { %921 = vmatprep.subr.bf16.mxu1 %v920_v17  ;;  %v401_v50 = vld [vmem:[#allocation2 + $0x138] sm:$0xff]  ;;  %v994_v52 = vpack.c.bf16 %v396_v46, %v394_v44  ;;  %v932_v53 = vpack.c.bf16 %v673_v48, %v671_v47  ;;  %v670_v54 = vld [vmem:[#allocation4 + $0x120] sm:$0xff]  ;;  %v672_v55 = vld [vmem:[#allocation4 + $0x130] sm:$0xff] }
  0x40   :  { %v398_v56 = vld [vmem:[#allocation2 + $0x120] sm:$0xff]  ;;  %v996_v57 = vpack.c.bf16 %v401_v50, %v399_v49  ;;  %v400_v58 = vld [vmem:[#allocation2 + $0x130] sm:$0xff]  ;;  %v675_v59 = vld [vmem:[#allocation4 + $0x148] sm:$0xff]  ;;  %v934_v63 = vpack.c.bf16 %v672_v55, %v670_v54 }
  0x41   :  { %983 = vmatpush1.bf16.msra.mxu0 %v982_v16  ;;  %v677_v60 = vld [vmem:[#allocation4 + $0x158] sm:$0xff]  ;;  %v403_v61 = vld [vmem:[#allocation2 + $0x148] sm:$0xff]  ;;  %v998_v0 = vpack.c.bf16 %v400_v58, %v398_v56  ;;  %v674_v2 = vld [vmem:[#allocation4 + $0x140] sm:$0xff] }
  0x42   :  { %985 = vmatprep.subr.bf16.mxu0 %v984_v21  ;;  %923 = vmatpush1.bf16.msra.mxu1 %v922_v27  ;;  %v405_v62 = vld [vmem:[#allocation2 + $0x158] sm:$0xff]  ;;  %v936_v1 = vpack.c.bf16 %v677_v60, %v675_v59  ;;  %v676_v3 = vld [vmem:[#allocation4 + $0x150] sm:$0xff]  ;;  %v402_v4 = vld [vmem:[#allocation2 + $0x140] sm:$0xff] }
  0x43   :  { %925 = vmatprep.subr.bf16.mxu1 %v924_v29  ;;  %v1000_v5 = vpack.c.bf16 %v405_v62, %v403_v61  ;;  %v404_v6 = vld [vmem:[#allocation2 + $0x150] sm:$0xff]  ;;  %v679_v7 = vld [vmem:[#allocation4 + $0x168] sm:$0xff]  ;;  %v681_v8 = vld [vmem:[#allocation4 + $0x178] sm:$0xff]  ;;  %v938_v11 = vpack.c.bf16 %v676_v3, %v674_v2 }
  0x44   :  { %v407_v9 = vld [vmem:[#allocation2 + $0x168] sm:$0xff]  ;;  %v409_v10 = vld [vmem:[#allocation2 + $0x178] sm:$0xff]  ;;  %v1002_v12 = vpack.c.bf16 %v404_v6, %v402_v4  ;;  %v940_v13 = vpack.c.bf16 %v681_v8, %v679_v7  ;;  %v678_v14 = vld [vmem:[#allocation4 + $0x160] sm:$0xff] }
  0x45   :  { %987 = vmatpush1.bf16.msra.mxu0 %v986_v28  ;;  %v680_v15 = vld [vmem:[#allocation4 + $0x170] sm:$0xff]  ;;  %v406_v16 = vld [vmem:[#allocation2 + $0x160] sm:$0xff]  ;;  %v1004_v17 = vpack.c.bf16 %v409_v10, %v407_v9  ;;  %v683_v19 = vld [vmem:[#allocation4 + $0x188] sm:$0xff] }
  0x46   :  { %989 = vmatprep.subr.bf16.mxu0 %v988_v33  ;;  %927 = vmatpush1.bf16.msra.mxu1 %v926_v39  ;;  %v408_v18 = vld [vmem:[#allocation2 + $0x170] sm:$0xff]  ;;  %v685_v20 = vld [vmem:[#allocation4 + $0x198] sm:$0xff]  ;;  %v411_v21 = vld [vmem:[#allocation2 + $0x188] sm:$0xff]  ;;  %v942_v23 = vpack.c.bf16 %v680_v15, %v678_v14 }
  0x47   :  { %929 = vmatprep.subr.bf16.mxu1 %v928_v41  ;;  %v413_v22 = vld [vmem:[#allocation2 + $0x198] sm:$0xff]  ;;  %v1006_v24 = vpack.c.bf16 %v408_v18, %v406_v16  ;;  %v944_v25 = vpack.c.bf16 %v685_v20, %v683_v19  ;;  %v682_v26 = vld [vmem:[#allocation4 + $0x180] sm:$0xff]  ;;  %v684_v27 = vld [vmem:[#allocation4 + $0x190] sm:$0xff] }
  0x48   :  { %v410_v28 = vld [vmem:[#allocation2 + $0x180] sm:$0xff]  ;;  %v1008_v29 = vpack.c.bf16 %v413_v22, %v411_v21  ;;  %v412_v30 = vld [vmem:[#allocation2 + $0x190] sm:$0xff]  ;;  %v687_v31 = vld [vmem:[#allocation4 + $0x1a8] sm:$0xff]  ;;  %v946_v35 = vpack.c.bf16 %v684_v27, %v682_v26 }
  0x49   :  { %991 = vmatpush1.bf16.msra.mxu0 %v990_v40  ;;  %v689_v32 = vld [vmem:[#allocation4 + $0x1b8] sm:$0xff]  ;;  %v415_v33 = vld [vmem:[#allocation2 + $0x1a8] sm:$0xff]  ;;  %v1010_v36 = vpack.c.bf16 %v412_v30, %v410_v28  ;;  %v686_v38 = vld [vmem:[#allocation4 + $0x1a0] sm:$0xff] }
  0x4a   :  { %993 = vmatprep.subr.bf16.mxu0 %v992_v45  ;;  %931 = vmatpush1.bf16.msra.mxu1 %v930_v51  ;;  %v417_v34 = vld [vmem:[#allocation2 + $0x1b8] sm:$0xff]  ;;  %v948_v37 = vpack.c.bf16 %v689_v32, %v687_v31  ;;  %v688_v39 = vld [vmem:[#allocation4 + $0x1b0] sm:$0xff]  ;;  %v414_v40 = vld [vmem:[#allocation2 + $0x1a0] sm:$0xff] }
  0x4b   :  { %933 = vmatprep.subr.bf16.mxu1 %v932_v53  ;;  %v1012_v41 = vpack.c.bf16 %v417_v34, %v415_v33  ;;  %v416_v42 = vld [vmem:[#allocation2 + $0x1b0] sm:$0xff]  ;;  %v691_v43 = vld [vmem:[#allocation4 + $0x1c8] sm:$0xff]  ;;  %v693_v44 = vld [vmem:[#allocation4 + $0x1d8] sm:$0xff]  ;;  %v950_v47 = vpack.c.bf16 %v688_v39, %v686_v38 }
  0x4c   :  { %v419_v45 = vld [vmem:[#allocation2 + $0x1c8] sm:$0xff]  ;;  %v421_v46 = vld [vmem:[#allocation2 + $0x1d8] sm:$0xff]  ;;  %v1014_v48 = vpack.c.bf16 %v416_v42, %v414_v40  ;;  %v952_v49 = vpack.c.bf16 %v693_v44, %v691_v43  ;;  %v690_v50 = vld [vmem:[#allocation4 + $0x1c0] sm:$0xff] }
  0x4d   :  { %995 = vmatpush1.bf16.msra.mxu0 %v994_v52  ;;  %v692_v51 = vld [vmem:[#allocation4 + $0x1d0] sm:$0xff]  ;;  %v418_v52 = vld [vmem:[#allocation2 + $0x1c0] sm:$0xff]  ;;  %v1016_v53 = vpack.c.bf16 %v421_v46, %v419_v45  ;;  %v695_v55 = vld [vmem:[#allocation4 + $0x1e8] sm:$0xff] }
  0x4e   :  { %997 = vmatprep.subr.bf16.mxu0 %v996_v57  ;;  %935 = vmatpush1.bf16.msra.mxu1 %v934_v63  ;;  %v420_v54 = vld [vmem:[#allocation2 + $0x1d0] sm:$0xff]  ;;  %v697_v56 = vld [vmem:[#allocation4 + $0x1f8] sm:$0xff]  ;;  %v423_v57 = vld [vmem:[#allocation2 + $0x1e8] sm:$0xff]  ;;  %v954_v59 = vpack.c.bf16 %v692_v51, %v690_v50 }
  0x4f   :  { %937 = vmatprep.subr.bf16.mxu1 %v936_v1  ;;  %v425_v58 = vld [vmem:[#allocation2 + $0x1f8] sm:$0xff]  ;;  %v1018_v60 = vpack.c.bf16 %v420_v54, %v418_v52  ;;  %v956_v61 = vpack.c.bf16 %v697_v56, %v695_v55  ;;  %v694_v62 = vld [vmem:[#allocation4 + $0x1e0] sm:$0xff]  ;;  %v696_v63 = vld [vmem:[#allocation4 + $0x1f0] sm:$0xff] }
  0x50   :  { %v422_v1 = vld [vmem:[#allocation2 + $0x1e0] sm:$0xff]  ;;  %v424_v2 = vld [vmem:[#allocation2 + $0x1f0] sm:$0xff]  ;;  %v958_v3 = vpack.c.bf16 %v696_v63, %v694_v62 }
  0x51   :  { %999 = vmatpush1.bf16.msra.mxu0 %v998_v0  ;;  %v1020_v0 = vpack.c.bf16 %v425_v58, %v423_v57  ;;  %v1022_v4 = vpack.c.bf16 %v424_v2, %v422_v1 }
  0x52   :  { %1001 = vmatprep.subr.bf16.mxu0 %v1000_v5  ;;  %939 = vmatpush1.bf16.msra.mxu1 %v938_v11  ;;  %v56_v5 = vlaneseq  ;;  %v49_v11 = vld [vmem:[%s1279_s1] sm:$0xff] }
  0x53   :  { %941 = vmatprep.subr.bf16.mxu1 %v940_v13 }
  0x54   :  { %v57_v6 = vshrl.u32 %v56_v5, 7 }
  0x55   :  { %1003 = vmatpush1.bf16.msra.mxu0 %v1002_v12 }
  0x56   :  { %1005 = vmatprep.subr.bf16.mxu0 %v1004_v17  ;;  %943 = vmatpush1.bf16.msra.mxu1 %v942_v23  ;;  %v1188_v7 = vsub.s32 0, %v57_v6  ;;  %v62_v8 = vsub.s32 4, %v57_v6  ;;  %v1190_v9 = vsub.s32 1, %v57_v6  ;;  %v86_v10 = vsub.s32 5, %v57_v6 }
  0x57   :  { %945 = vmatprep.subr.bf16.mxu1 %v944_v25  ;;  %v108_v12 = vsub.s32 2, %v57_v6  ;;  %v112_v13 = vsub.s32 6, %v57_v6  ;;  %v134_v14 = vsub.s32 3, %v57_v6  ;;  %v138_v15 = vsub.s32 7, %v57_v6 }
  0x58   :  { %v59_v16 = vrot.slane %v49_v11, %v1188_v7  ;;  %v63_v17 = vrot.slane %v49_v11, %v62_v8  ;;  %v83_v18 = vrot.slane %v49_v11, %v1190_v9  ;;  %v87_v19 = vrot.slane %v49_v11, %v86_v10 }
  0x59   :  { %1007 = vmatpush1.bf16.msra.mxu0 %v1006_v24  ;;  %v109_v20 = vrot.slane %v49_v11, %v108_v12  ;;  %v113_v21 = vrot.slane %v49_v11, %v112_v13  ;;  %v135_v24 = vrot.slane %v49_v11, %v134_v14  ;;  %v139_v25 = vrot.slane %v49_v11, %v138_v15 }
  0x5a   :  { %1009 = vmatprep.subr.bf16.mxu0 %v1008_v29  ;;  %947 = vmatpush1.bf16.msra.mxu1 %v946_v35  ;;  %v69_v26 = vrot.slane %v59_v16, %v1188_v7  ;;  %v73_v27 = vrot.slane %v63_v17, %v1188_v7  ;;  %v93_v28 = vrot.slane %v83_v18, %v1190_v9  ;;  %v1126_v16 = vmov 2475754826  }
  0x5b   :  { %949 = vmatprep.subr.bf16.mxu1 %v948_v37  ;;  %v97_v29 = vrot.slane %v87_v19, %v1190_v9  ;;  %v119_v30 = vrot.slane %v109_v20, %v108_v12  ;;  %v123_v31 = vrot.slane %v113_v21, %v108_v12  ;;  %v145_v32 = vrot.slane %v135_v24, %v134_v14 }
  0x5c   :  { %v149_v33 = vrot.slane %v139_v25, %v134_v14  ;;  %v1125_v14 = vmov 683565275   ;;  %v1127_v18 = vmov 2131351028   ;;  %v1129_v25 = vmov 920167782  }
  0x5d   :  { %1011 = vmatpush1.bf16.msra.mxu0 %v1010_v36 }
  0x5e   :  { %1013 = vmatprep.subr.bf16.mxu0 %v1012_v41  ;;  %951 = vmatpush1.bf16.msra.mxu1 %v950_v47 }
  0x5f   :  { %953 = vmatprep.subr.bf16.mxu1 %v952_v49 }
  0x61   :  { %1015 = vmatpush1.bf16.msra.mxu0 %v1014_v48 }
  0x62   :  { %1017 = vmatprep.subr.bf16.mxu0 %v1016_v53  ;;  %955 = vmatpush1.bf16.msra.mxu1 %v954_v59 }
  0x63   :  { %957 = vmatprep.subr.bf16.mxu1 %v956_v61 }
  0x65   :  { %1019 = vmatpush1.bf16.msra.mxu0 %v1018_v60 }
  0x66   :  { %1021 = vmatprep.subr.bf16.mxu0 %v1020_v0  ;;  %959 = vmatpush1.bf16.msra.mxu1 %v958_v3 }
  0x69   :  { %1023 = vmatpush1.bf16.msra.mxu0 %v1022_v4 }
  0xa6   :  { %v53_v22 = vpop.permute.xlu0 %52  ;;  %v104_v23 = vpop.permute.xlu1 %103 }
  0xa7   :  { %v74_v36 = vmul.f32 %v69_v26, %v53_v22  ;;  %v75_v37 = vmul.f32 %v73_v27, %v53_v22  ;;  %v124_v40 = vmul.f32 %v119_v30, %v104_v23  ;;  %v125_v41 = vmul.f32 %v123_v31, %v104_v23 }
  0xa8   :  { %v1128_v22 = vmov 2102212464  }
  0xab   :  { %v78_v34 = vpop.permute.xlu0 %77  ;;  %v130_v35 = vpop.permute.xlu1 %129 }
  0xac   :  { %v98_v38 = vmul.f32 %v93_v28, %v78_v34  ;;  %v99_v39 = vmul.f32 %v97_v29, %v78_v34  ;;  %v150_v44 = vmul.f32 %v145_v32, %v130_v35  ;;  %v151_v45 = vmul.f32 %v149_v33, %v130_v35 }
  0xad   :  { %v1130_v28 = vmov 1326507024  }
  0xae   :  { %v100_v42 = vadd.f32 %v98_v38, %v74_v36  ;;  %v101_v43 = vadd.f32 %v99_v39, %v75_v37 }
  0xb0   :  { %v126_v46 = vadd.f32 %v124_v40, %v100_v42  ;;  %v127_v47 = vadd.f32 %v125_v41, %v101_v43 }
  0xb2   :  { %v152_v48 = vadd.f32 %v150_v44, %v126_v46  ;;  %v153_v49 = vadd.f32 %v151_v45, %v127_v47 }
  0xb4   :  { %v1201_v50 = vmul.f32 3.1415927, %v152_v48  ;;  %v1203_v51 = vmul.f32 3.1415927, %v153_v49 }
  0xb6   :  { %v159_v52 = vand.u32 2139095040, %v1201_v50  ;;  %v262_v53 = vand.u32 2139095040, %v1203_v51  ;;  %v259_v54 = vand.u32 2147483647, %v1203_v51  ;;  %v156_v55 = vand.u32 2147483647, %v1201_v50 }
  0xb7   :  { %vm261_vm14 = vcmp.lt.s32.totalorder %v1203_v51, 0 }
  0xb8   :  { %v160_v56 = vshrl.u32 %v159_v52, 23  ;;  %v263_v57 = vshrl.u32 %v262_v53, 23  ;;  %v266_v60 = vand.u32 8388607, %v259_v54  ;;  %v163_v61 = vand.u32 8388607, %v156_v55 }
  0xb9   :  { %vm260_vm15 = vcmp.le.f32.partialorder %v259_v54, 0.7853982 }
  0xba   :  { %v880_v58 = vadd.s32 4294967169, %v160_v56  ;;  %v884_v59 = vadd.s32 4294967169, %v263_v57  ;;  %v267_v0 = vor.u32 8388608, %v266_v60  ;;  %v164_v1 = vor.u32 8388608, %v163_v61 }
  0xbc   :  { %v166_v62 = vadd.s32 1, %v880_v58  ;;  %v269_v63 = vadd.s32 1, %v884_v59  ;;  %v1217_v11 = vshll.u32 %v267_v0, 8  ;;  %v1219_v12 = vshll.u32 %v164_v1, 8 }
  0xbe   :  { %vm167_vm0 = vcmp.gt.s32.totalorder %v166_v62, 0  ;;  %vm270_vm1 = vcmp.gt.s32.totalorder %v269_v63, 0 }
  0xbf   :  { %v168_v2 = vsel %vm167_vm0, %v166_v62, 0  ;;  %v271_v3 = vsel %vm270_vm1, %v269_v63, 0  ;;  %vm158_vm0 = vcmp.lt.s32.totalorder %v1201_v50, 0  ;;  %vm157_vm1 = vcmp.le.f32.partialorder %v156_v55, 0.7853982 }
  0xc0   :  { %v1213_v4 = vand.u32 31, %v168_v2  ;;  %v273_v5 = vand.u32 31, %v271_v3  ;;  %v272_v6 = vshrl.u32 %v271_v3, 5  ;;  %v1215_v8 = vshrl.u32 %v168_v2, 5 }
  0xc2   :  { %v274_v10 = vsub.s32 32, %v273_v5  ;;  %v171_v13 = vsub.s32 32, %v1213_v4  ;;  %v276_v15 = vshll.u32 %v1125_v14, %v273_v5  ;;  %v279_v17 = vshll.u32 %v1126_v16, %v273_v5 }
  0xc3   :  { %v282_v19 = vshll.u32 %v1127_v18, %v273_v5  ;;  %v285_v24 = vshll.u32 %v1128_v22, %v273_v5  ;;  %v288_v27 = vshll.u32 %v1129_v25, %v273_v5  ;;  %vm291_vm2 = vcmp.lt.s32.totalorder %v272_v6, 1 }
  0xc4   :  { %v277_v20 = vshrl.u32 %v1126_v16, %v274_v10  ;;  %v280_v21 = vshrl.u32 %v1127_v18, %v274_v10  ;;  %v283_v23 = vshrl.u32 %v1128_v22, %v274_v10  ;;  %v286_v26 = vshrl.u32 %v1129_v25, %v274_v10 }
  0xc5   :  { %v289_v29 = vshrl.u32 %v1130_v28, %v274_v10  ;;  %v275_v30 = vshrl.u32 %v1125_v14, %v274_v10  ;;  %vm293_vm3 = vcmp.lt.s32.totalorder %v272_v6, 3  ;;  %vm294_vm4 = vcmp.lt.s32.totalorder %v272_v6, 4 }
  0xc6   :  { %v278_v31 = vor.u32 %v277_v20, %v276_v15  ;;  %v281_v32 = vor.u32 %v280_v21, %v279_v17  ;;  %v284_v33 = vor.u32 %v283_v23, %v282_v19  ;;  %v287_v34 = vor.u32 %v286_v26, %v285_v24 }
  0xc7   :  { %v290_v35 = vor.u32 %v289_v29, %v288_v27  ;;  %v174_v43 = vshrl.u32 %v1126_v16, %v171_v13  ;;  %vm292_vm5 = vcmp.lt.s32.totalorder %v272_v6, 2  ;;  %v173_v46 = vshll.u32 %v1125_v14, %v1213_v4 }
  0xc8   :  { %v295_v36 = vsel %vm291_vm2, %v275_v30, %v278_v31  ;;  %v296_v37 = vsel %vm294_vm4, %v284_v33, 2102212464  ;;  %v299_v38 = vsel %vm291_vm2, %v278_v31, %v281_v32  ;;  %v303_v39 = vsel %vm291_vm2, %v281_v32, %v284_v33 }
  0xc9   :  { %v297_v40 = vsel %vm293_vm3, %v281_v32, %v296_v37  ;;  %v300_v41 = vsel %vm294_vm4, %v287_v34, 920167782  ;;  %v304_v42 = vsel %vm294_vm4, %v290_v35, 1326507024  ;;  %v176_v52 = vshll.u32 %v1126_v16, %v1213_v4 }
  0xca   :  { %v301_v44 = vsel %vm293_vm3, %v284_v33, %v300_v41  ;;  %v305_v45 = vsel %vm293_vm3, %v287_v34, %v304_v42  ;;  %v298_v47 = vsel %vm292_vm5, %v295_v36, %v297_v40  ;;  %v175_v59 = vor.u32 %v174_v43, %v173_v46 }
  0xcb   :  { %v302_v48 = vsel %vm292_vm5, %v299_v38, %v301_v44  ;;  %v306_v49 = vsel %vm292_vm5, %v303_v39, %v305_v45  ;;  %v177_v60 = vshrl.u32 %v1127_v18, %v171_v13  ;;  %v179_v61 = vshll.u32 %v1127_v18, %v1213_v4 }
  0xcc   :  { %v1225_v53 = vmul.u32.u64.low %v1217_v11, %v306_v49  ;;  %v1226_v56 = vmul.u32.u64.high %v1217_v11, %v306_v49, %v1225_v53  ;;  %v1229_v57 = vmul.u32.u64.low %v1217_v11, %v302_v48  ;;  %v1230_v58 = vmul.u32.u64.high %v1217_v11, %v302_v48, %v1229_v57 }
  0xcd   :  { %v180_v62 = vshrl.u32 %v1128_v22, %v171_v13  ;;  %v172_v63 = vshrl.u32 %v1125_v14, %v171_v13  ;;  %v182_v0 = vshll.u32 %v1128_v22, %v1213_v4  ;;  %v183_v1 = vshrl.u32 %v1129_v25, %v171_v13 }
  0xce   :  { %v186_v2 = vshrl.u32 %v1130_v28, %v171_v13  ;;  %v314_v3 = vmul.u32 %v1217_v11, %v298_v47  ;;  %v178_v5 = vor.u32 %v177_v60, %v176_v52  ;;  %v185_v10 = vshll.u32 %v1129_v25, %v1213_v4 }
  0xcf   :  { %v181_v6 = vor.u32 %v180_v62, %v179_v61  ;;  %vm316_vm6 = vc.u32 %v1226_v56, %v1229_v57  ;;  %v317_v15 = vadd.s32 1, %v1230_v58  ;;  %v184_v16 = vor.u32 %v183_v1, %v182_v0 }
  0xd0   :  { %vm188_vm7 = vcmp.lt.s32.totalorder %v1215_v8, 1  ;;  %v187_v17 = vor.u32 %v186_v2, %v185_v10  ;;  %vm190_vm8 = vcmp.lt.s32.totalorder %v1215_v8, 3  ;;  %vm191_vm9 = vcmp.lt.s32.totalorder %v1215_v8, 4 }
  0xd1   :  { %v196_v14 = vsel %vm188_vm7, %v175_v59, %v178_v5  ;;  %v318_v13 = vsel %vm316_vm6, %v317_v15, %v1230_v58  ;;  %v193_v11 = vsel %vm191_vm9, %v181_v6, 2102212464  ;;  %v197_v18 = vsel %vm191_vm9, %v184_v16, 920167782 }
  0xd2   :  { %v200_v19 = vsel %vm188_vm7, %v178_v5, %v181_v6  ;;  %v319_v20 = vadd.s32 %v318_v13, %v314_v3  ;;  %vm189_vm10 = vcmp.lt.s32.totalorder %v1215_v8, 2  ;;  %v198_v4 = vsel %vm190_vm8, %v181_v6, %v197_v18 }
  0xd3   :  { %v201_v21 = vsel %vm191_vm9, %v187_v17, 1326507024  ;;  %v192_v22 = vsel %vm188_vm7, %v172_v63, %v175_v59  ;;  %v194_v23 = vsel %vm190_vm8, %v178_v5, %v193_v11  ;;  %v199_v24 = vsel %vm189_vm10, %v196_v14, %v198_v4 }
  0xd4   :  { %v202_v25 = vsel %vm190_vm8, %v184_v16, %v201_v21  ;;  %v320_v26 = vadd.s32 536870912, %v319_v20  ;;  %v1244_v28 = vmul.u32.u64.low %v1219_v12, %v199_v24  ;;  %v1245_v29 = vmul.u32.u64.high %v1219_v12, %v199_v24, %v1244_v28 }
  0xd5   :  { %v203_v27 = vsel %vm189_vm10, %v200_v19, %v202_v25  ;;  %v195_v33 = vsel %vm189_vm10, %v192_v22, %v194_v23  ;;  %v315_v49 = vadd.s32 %v1229_v57, %v1226_v56  ;;  %vm351_vm8 = vweird.f32 %v1203_v51 }
  0xd6   :  { %v1248_v30 = vmul.u32.u64.low %v1219_v12, %v203_v27  ;;  %v1249_v31 = vmul.u32.u64.high %v1219_v12, %v203_v27, %v1248_v30  ;;  %v321_v32 = vshrl.u32 %v320_v26, 30  ;;  %v214_v8 = vadd.s32 1, %v1245_v29 }
  0xd7   :  { %v211_v35 = vmul.u32 %v1219_v12, %v195_v33 }
  0xd8   :  { %v322_v34 = vshll.u32 %v321_v32, 30  ;;  %vm213_vm11 = vc.u32 %v1249_v31, %v1244_v28  ;;  %v212_v6 = vadd.s32 %v1244_v28, %v1249_v31  ;;  %v345_v57 = vsub.s32 4, %v321_v32 }
  0xd9   :  { %v215_v37 = vsel %vm213_vm11, %v214_v8, %v1245_v29 }
  0xda   :  { %v323_v36 = vsub.s32 %v319_v20, %v322_v34  ;;  %v216_v38 = vadd.s32 %v215_v37, %v211_v35  ;;  %v346_v20 = vsel %vm261_vm14, %v345_v57, %v321_v32 }
  0xdb   :  { %v348_v22 = vsel %vm260_vm15, 0, %v346_v20 }
  0xdc   :  { %v325_v39 = vsub.s32 0, %v323_v36  ;;  %v217_v40 = vadd.s32 536870912, %v216_v38  ;;  %v623_v27 = vadd.s32 3, %v348_v22  ;;  %v352_v31 = vand.u32 3, %v348_v22 }
  0xde   :  { %v885_v41 = vmin.u32 %v325_v39, %v323_v36  ;;  %v218_v42 = vshrl.u32 %v217_v40, 30  ;;  %v624_v30 = vand.u32 3, %v623_v27  ;;  %vm354_vm3 = vcmp.eq.s32.totalorder %v352_v31, 0 }
  0xdf   :  { %vm357_vm4 = vcmp.eq.s32.totalorder %v352_v31, 2  ;;  %vm353_vm7 = vcmp.lt.s32.totalorder %v352_v31, 2 }
  0xe0   :  { %v327_v43 = vclz %v885_v41  ;;  %v219_v44 = vshll.u32 %v218_v42, 30  ;;  %v242_v26 = vsub.s32 4, %v218_v42  ;;  %vm629_vm2 = vcmp.eq.s32.totalorder %v624_v30, 2 }
  0xe1   :  { %vm626_vm5 = vcmp.eq.s32.totalorder %v624_v30, 0  ;;  %vm625_vm6 = vcmp.lt.s32.totalorder %v624_v30, 2 }
  0xe2   :  { %v886_v45 = vadd.s32 4294967294, %v327_v43  ;;  %v220_v46 = vsub.s32 %v216_v38, %v219_v44  ;;  %v243_v29 = vsel %vm158_vm0, %v242_v26, %v218_v42 }
  0xe3   :  { %v245_v34 = vsel %vm157_vm1, 0, %v243_v29 }
  0xe4   :  { %vm887_vm12 = vcmp.lt.s32.totalorder %v886_v45, 0  ;;  %v222_v48 = vsub.s32 0, %v220_v46  ;;  %v519_v55 = vadd.s32 3, %v245_v34 }
  0xe5   :  { %v330_v47 = vsel %vm887_vm12, 0, %v886_v45 }
  0xe6   :  { %v331_v12 = vsub.s32 32, %v330_v47  ;;  %v335_v52 = vsub.s32 4294967266, %v330_v47  ;;  %v881_v53 = vmin.u32 %v222_v48, %v220_v46  ;;  %v332_v58 = vshll.u32 %v323_v36, %v330_v47 }
  0xe7   :  { %v520_v45 = vand.u32 3, %v519_v55 }
  0xe8   :  { %v333_v59 = vshrl.u32 %v315_v49, %v331_v12  ;;  %v336_v60 = vadd.s32 127, %v335_v52  ;;  %v224_v61 = vclz %v881_v53 }
  0xe9   :  { %vm525_vm9 = vcmp.eq.s32.totalorder %v520_v45, 2  ;;  %vm522_vm11 = vcmp.eq.s32.totalorder %v520_v45, 0 }
  0xea   :  { %v334_v62 = vor.u32 %v333_v59, %v332_v58  ;;  %v337_v63 = vshll.u32 %v336_v60, 23  ;;  %v882_v0 = vadd.s32 4294967294, %v224_v61 }
  0xec   :  { %v338_v1 = vor.u32 4788187, %v337_v63  ;;  %vm883_vm13 = vcmp.lt.s32.totalorder %v882_v0, 0  ;;  %v341_v3 = vcvt.s32.f32 %v334_v62  ;;  %v840_v63 = vld [vmem:[%s1282_s4] sm:$0x3] }
  0xed   :  { %v227_v5 = vsel %vm883_vm13, 0, %v882_v0  ;;  %vm521_vm13 = vcmp.lt.s32.totalorder %v520_v45, 2  ;;  %v845_v0 = vrot.slane %v840_v63, %v1188_v7 }
  0xee   :  { %v339_v2 = vand.u32 2147483647, %v338_v1  ;;  %v228_v10 = vsub.s32 32, %v227_v5  ;;  %v232_v15 = vsub.s32 4294967266, %v227_v5  ;;  %v229_v16 = vshll.u32 %v220_v46, %v227_v5 }
  0xef   :  { %v249_v46 = vand.u32 3, %v245_v34 }
  0xf0   :  { %v342_v56 = vmul.f32 %v341_v3, %v339_v2  ;;  %v230_v17 = vshrl.u32 %v212_v6, %v228_v10  ;;  %v233_v14 = vadd.s32 127, %v232_v15  ;;  %v849_v3 = vrot.slane %v840_v63, %v1190_v9 }
  0xf1   :  { %vm254_vm10 = vcmp.eq.s32.totalorder %v249_v46, 2  ;;  %vm251_vm12 = vcmp.eq.s32.totalorder %v249_v46, 0 }
  0xf2   :  { %v343_v13 = vxor.u32 2147483648, %v342_v56  ;;  %v231_v11 = vor.u32 %v230_v17, %v229_v16  ;;  %v234_v18 = vshll.u32 %v233_v14, 23 }
  0xf4   :  { %v344_v19 = vsel %vm261_vm14, %v343_v13, %v342_v56  ;;  %v235_v21 = vor.u32 4788187, %v234_v18  ;;  %v238_v24 = vcvt.s32.f32 %v231_v11  ;;  %vm250_vm14 = vcmp.lt.s32.totalorder %v249_v46, 2 }
  0xf5   :  { %v347_v4 = vsel %vm260_vm15, %v1203_v51, %v344_v19  ;;  %vm248_vm15 = vweird.f32 %v1201_v50 }
  0xf6   :  { %1053 = vcosq.f32 %v347_v4  ;;  %v236_v23 = vand.u32 2147483647, %v235_v21 }
  0xf7   :  { %1055 = vsinq.f32 %v347_v4 }
  0xf8   :  { %v239_v25 = vmul.f32 %v238_v24, %v236_v23 }
  0xfa   :  { %v240_v28 = vxor.u32 2147483648, %v239_v25 }
  0xfc   :  { %v241_v54 = vsel %vm158_vm0, %v240_v28, %v239_v25 }
  0xfd   :  { %v244_v32 = vsel %vm157_vm1, %v1201_v50, %v241_v54 }
  0xfe   :  { %1057 = vcosq.f32 %v244_v32 }
  0xff   :  { %1059 = vsinq.f32 %v244_v32 }
 0x100   :  { %v1054_v33 = vpop.eup %1053 }
 0x101   :  { %v1056_v8 = vpop.eup %1055  ;;  %v358_v35 = vxor.u32 2147483648, %v1054_v33 }
 0x102   :  { %v355_v36 = vxor.u32 2147483648, %v1056_v8 }
 0x103   :  { %v631_v37 = vsel %vm629_vm2, %v358_v35, %v1056_v8  ;;  %v359_v38 = vsel %vm357_vm4, %v358_v35, %v1056_v8 }
 0x104   :  { %v628_v39 = vsel %vm626_vm5, %v1054_v33, %v355_v36  ;;  %v356_v40 = vsel %vm354_vm3, %v1054_v33, %v355_v36 }
 0x105   :  { %v632_v41 = vsel %vm625_vm6, %v628_v39, %v631_v37  ;;  %v360_v42 = vsel %vm353_vm7, %v356_v40, %v359_v38 }
 0x106   :  { %v633_v43 = vsel %vm351_vm8, nan, %v632_v41  ;;  %v361_v44 = vsel %vm351_vm8, nan, %v360_v42 }
 0x107   :  { %762 = vmatprep.mubr.f32.mxu1 %v633_v43  ;;  %833 = vmatprep.mubr.f32.mxu0 %v361_v44 }
 0x108   :  { %v1058_v47 = vpop.eup %1057 }
 0x109   :  { %v1060_v48 = vpop.eup %1059  ;;  %v255_v49 = vxor.u32 2147483648, %v1058_v47 }
 0x10a   :  { %v252_v12 = vxor.u32 2147483648, %v1060_v48 }
 0x10b   :  { %v527_v52 = vsel %vm525_vm9, %v255_v49, %v1060_v48  ;;  %v256_v53 = vsel %vm254_vm10, %v255_v49, %v1060_v48 }
 0x10c   :  { %v524_v51 = vsel %vm522_vm11, %v1058_v47, %v252_v12  ;;  %v253_v58 = vsel %vm251_vm12, %v1058_v47, %v252_v12 }
 0x10d   :  { %v528_v59 = vsel %vm521_vm13, %v524_v51, %v527_v52  ;;  %v257_v60 = vsel %vm250_vm14, %v253_v58, %v256_v53 }
 0x10e   :  { %v529_v61 = vsel %vm248_vm15, nan, %v528_v59  ;;  %v258_v62 = vsel %vm248_vm15, nan, %v257_v60 }
 0x10f   :  { %763 = vmatmul.mubr.f32.vlgmr.msra.gmra.mrb[0].mxu1 %v529_v61  ;;  %834 = vmatmul.mubr.f32.vlgmr.msra.gmra.mrb[0].mxu0 %v258_v62 }
 0x1e2   :  { %v764_v1 = vpop.f32.mrb[0].mxu1  ;;  %v835_v2 = vpop.f32.mrb[0].mxu0 }
 0x1e3   :  { %v836_v5 = vadd.f32 %v835_v2, %v764_v1  ;;  %v766_v6 = vpop.f32.mrb[1].mxu1  ;;  %v837_v10 = vpop.f32.mrb[1].mxu0 }
 0x1e4   :  { %v838_v50 = vadd.f32 %v837_v10, %v766_v6 }
 0x1e5   :  { %v852_v15 = vadd.f32 %v845_v0, %v836_v5 }
 0x1e6   :  { %v853_v56 = vadd.f32 %v849_v3, %v838_v50 }
 0x1e7   :  { %854 = vmax.xlane.f32.xlu1 %v852_v15 }
 0x1e8   :  { %864 = vmax.xlane.f32.xlu0 %v853_v56 }
 0x274   :  { %v855_v57 = vpop.xlane.xlu1 %854 }
 0x275   :  { %v856_v16 = vsub.f32 %v852_v15, %v855_v57  ;;  %v865_v17 = vpop.xlane.xlu0 %864 }
 0x276   :  { %v866_v14 = vsub.f32 %v853_v56, %v865_v17 }
 0x277   :  { %v857_v13 = vmul.f32 1.442695, %v856_v16 }
 0x278   :  { %v867_v11 = vmul.f32 1.442695, %v866_v14 }
 0x279   :  { %1061 = vpow2.f32 %v857_v13 }
 0x27a   :  { %1063 = vpow2.f32 %v867_v11 }
 0x283   :  { %v1062_v7 = vpop.eup %1061 }
 0x284   :  { %v1064_v18 = vpop.eup %1063  ;;  %859 = vadd.xlane.f32.xlu0 %v1062_v7 }
 0x285   :  { %869 = vadd.xlane.f32.xlu1 %v1064_v18 }
 0x311   :  { %v860_v9 = vpop.xlane.xlu0 %859 }
 0x312   :  { %1065 = vrcp.f32 %v860_v9  ;;  %v870_v19 = vpop.xlane.xlu1 %869 }
 0x313   :  { %1067 = vrcp.f32 %v870_v19 }
 0x31c   :  { %v1066_v20 = vpop.eup %1065 }
 0x31d   :  { %v1068_v4 = vpop.eup %1067  ;;  %v862_v21 = vmul.f32 %v1066_v20, %v1062_v7 }
 0x31e   :  { %v872_v22 = vmul.f32 %v1068_v4, %v1064_v18 }
 0x31f   :  { %863 = vst [vmem:[%s1283_s5] sm:$0xff] %v862_v21 }
 0x320   :  { %873 = vst [vmem:[%s1283_s5 + $0x8] sm:$0xff] %v872_v22 }
 0x321   :  { %878 = vsyncpa [#allocation3], 1 }
 0x322   :  { %879 = vsyncpa [#allocation5], 1 }

</bundles_post_ra>
